<compile_context>
chip_gen: v7x
topology: tpu7x:2x2x1
jax: 0.10.0
libtpu: 0.0.40
codegen_flags: <defaults>
</compile_context>

<pallas_src>
import functools
from dataclasses import dataclass, field
from typing import Dict, List, Optional

import numpy as np
import jax
import jax.numpy as jnp
from jax.experimental import pallas as pl
from jax.experimental.pallas import tpu as pltpu


def _vmem_limit_bytes() -> int:
    """Scoped VMEM limit: 48 MiB everywhere (safe on v7x's 64 MiB per-TC VMEM),
    96 MiB when a 128 MiB-VMEM generation (v5e/v6e) is detected."""
    limit = 48 * 1024 * 1024
    try:
        cap = int(getattr(pltpu.get_tpu_info(), "vmem_capacity_bytes", 0))
        if cap >= 128 * 1024 * 1024:
            limit = 96 * 1024 * 1024
    except Exception:
        pass
    return limit


def _sublane_align(dtype) -> int:
    """Required multiple for the second-minor block dim, per element width."""
    itemsize = np.dtype(dtype).itemsize
    return {4: 8, 2: 16, 1: 32}.get(itemsize, 8)


def _pick_tile(n: int, cap: int, align: int) -> int:
    """Largest divisor of n that is <= cap and a multiple of `align` (else n)."""
    if n <= cap:
        return n
    for d in range(min(cap, n), 0, -1):
        if n % d == 0 and d % align == 0:
            return d
    return n


# ----------------------------------------------------------------------------
# Pallas kernels (the compute hot paths)
# ----------------------------------------------------------------------------

def _fill_kernel(param_ref, out_ref):
    # param_ref: (1, F) learned default state, flattened lane-dense (resident).
    # out_ref:   (TB, F) batch tile of the broadcast output.
    out_ref[...] = jnp.broadcast_to(param_ref[...], out_ref.shape)


def broadcast_default_state(param: jax.Array, batch: int, *,
                            block_bytes: int = 4 * 1024 * 1024) -> jax.Array:
    """Broadcast a learned (slots, hidden) default state to (batch, slots, hidden).

    Pure HBM-write-bound fill: output is a lane-dense (batch, slots*hidden)
    slab, with multi-MiB batch tiles per grid step to amortize per-step
    pipeline overhead, reshaped back outside the kernel.
    """
    slots, hidden = param.shape
    feat = slots * hidden                                   # lane-dense flat feature axis
    itemsize = np.dtype(param.dtype).itemsize
    align = _sublane_align(param.dtype)
    row_bytes = max(feat * itemsize, 1)
    target_rows = max(align, block_bytes // row_bytes)
    # Keep >= 2 grid steps (so the "parallel" batch axis can shard across v7x's
    # 2 TensorCores) only when each step still writes >= 1 MiB.
    half = batch // 2
    if half >= align and half * row_bytes >= (1 << 20):
        target_rows = min(target_rows, half)
    tb = _pick_tile(batch, min(batch, target_rows), align)

    flat = pl.pallas_call(
        _fill_kernel,
        out_shape=jax.ShapeDtypeStruct((batch, feat), param.dtype),
        grid=(batch // tb,),
        in_specs=[pl.BlockSpec((1, feat), lambda b: (0, 0))],
        out_specs=pl.BlockSpec((tb, feat), lambda b: (b, 0)),
        compiler_params=pltpu.CompilerParams(
            dimension_semantics=("parallel",),
            vmem_limit_bytes=_vmem_limit_bytes()),
    )(param.reshape(1, feat))
    return flat.reshape(batch, slots, hidden)


def _pool_proj_kernel(x_ref, w_ref, out_ref, acc_ref, *, inv_seq: float):
    # x_ref:   (TB, TS, hidden) batch/seq tile of the content tensor
    # w_ref:   (hidden, TN) projection weight tile
    # out_ref: (TB, TN) — same block across the seq grid axis (accumulator output)
    # acc_ref: (TB, hidden) f32 running sum over the sequence axis
    sk = pl.program_id(2)

    @pl.when(sk == 0)
    def _():
        acc_ref[...] = jnp.zeros_like(acc_ref)

    # Pool first: mean_s(x @ W) == (mean_s x) @ W — cheap VPU reduction here,
    # one well-shaped matmul at finalize. (DMA-bound at these tile sizes, so no
    # compute-side tricks needed.)
    acc_ref[...] += jnp.sum(x_ref[...].astype(jnp.float32), axis=1)

    @pl.when(sk == pl.num_programs(2) - 1)
    def _():
        pooled = acc_ref[...] * inv_seq                               # (TB, hidden) f32
        # Keep the pooled LHS in f32 (upcast the weight if it is bf16) so a
        # low-precision weight does not degrade the pooled mean.
        y = jnp.dot(pooled, w_ref[...].astype(jnp.float32),
                    preferred_element_type=jnp.float32)               # (TB, TN)
        out_ref[...] = y.astype(out_ref.dtype)


def pooled_projection(x: jax.Array, w: jax.Array, *,
                      x_block_bytes: Optional[int] = None,
                      w_block_bytes: int = 4 * 1024 * 1024) -> jax.Array:
    """mean_over_seq(x) @ w, computed with a tiled seq reduction.

    x: (batch, seq, hidden)   w: (hidden, state_dim)  ->  (batch, state_dim) f32

    Tiling:
      - batch tile tb <= 256 (fills the MXU on the finalize matmul),
      - seq tile ts sized so the streaming x block is ~8-16 MiB (double-buffered),
      - state_dim tile tn keeps the resident weight block to a few MiB
        (adds an N grid axis only when the weight is actually large; note x is
        re-streamed per N tile in that case).
    """
    batch, seq, hidden = x.shape
    hidden_w, state_dim = w.shape
    assert hidden_w == hidden

    vmem_limit = _vmem_limit_bytes()
    if x_block_bytes is None:
        # ~8 MiB under the 48 MiB limit, ~16 MiB under the 96 MiB limit; leaves
        # room for double buffering plus any f32 upcast temporary of the block.
        x_block_bytes = min(16 * 1024 * 1024, vmem_limit // 6)

    x_item = np.dtype(x.dtype).itemsize
    w_item = np.dtype(w.dtype).itemsize
    ts_align = _sublane_align(x.dtype)

    # N tiling: keep the resident weight block to a few MiB (v7x VMEM budget).
    tn_cap = max(128, w_block_bytes // max(hidden * w_item, 1))
    tn = _pick_tile(state_dim, tn_cap, 128)
    # batch tile: MXU-friendly (<=256), multiple of 8 (f32 acc/out second-minor).
    tb = _pick_tile(batch, 256, 8)
    # seq tile: MiB-scale streaming block, dtype-aligned on the second-minor axis.
    per_row = max(tb * hidden * x_item, 1)
    ts_cap = max(ts_align, x_block_bytes // per_row)
    ts = _pick_tile(seq, ts_cap, ts_align)

    kernel = functools.partial(_pool_proj_kernel, inv_seq=1.0 / seq)
    return pl.pallas_call(
        kernel,
        out_shape=jax.ShapeDtypeStruct((batch, state_dim), jnp.float32),
        grid=(batch // tb, state_dim // tn, seq // ts),      # reduction (seq) last
        in_specs=[
            pl.BlockSpec((tb, ts, hidden), lambda b, n, s: (b, s, 0)),
            pl.BlockSpec((hidden, tn), lambda b, n, s: (0, n)),
        ],
        out_specs=pl.BlockSpec((tb, tn), lambda b, n, s: (b, n)),
        scratch_shapes=[pltpu.VMEM((tb, hidden), jnp.float32)],
        compiler_params=pltpu.CompilerParams(
            dimension_semantics=("parallel", "parallel", "arbitrary"),
            vmem_limit_bytes=vmem_limit),
    )(x, w)


# ----------------------------------------------------------------------------
# JAX mirrors of the PyTorch state-management classes
# ----------------------------------------------------------------------------

class SetupSublayer:
    """Interface: forward(batch_shape, tensors) -> jax.Array."""

    def forward(self, batch_shape: List[int], tensors: Dict[str, jax.Array]) -> jax.Array:
        raise NotImplementedError(
            "SetupSublayer is an interface and should be subclassed.")


class ConstantStateSetup(SetupSublayer):
    """Broadcasts a learned default state over the batch (Pallas fill kernel)."""

    def __init__(self, default_state: jax.Array):
        self.default_state = default_state  # (slots, hidden)

    def forward(self, batch_shape: List[int], tensors: Dict[str, jax.Array]) -> jax.Array:
        assert len(batch_shape) == 1  # this sublayer handles 1 batch dim
        return broadcast_default_state(self.default_state, batch_shape[0])


class PooledProjectionSetup(SetupSublayer):
    """Builds a state from a content tensor via seq-mean + matmul (Pallas kernel)."""

    def __init__(self, weight: jax.Array):
        self.weight = weight  # (hidden, state_dim)

    def forward(self, batch_shape: List[int], tensors: Dict[str, jax.Array]) -> jax.Array:
        x = tensors["embedding"]  # (batch, seq, hidden)
        assert list(x.shape[:len(batch_shape)]) == list(batch_shape)
        return pooled_projection(x, self.weight)


@dataclass
class _SetupFrame:
    layer: SetupSublayer
    required_tensors: List[str]
    constraints: List[str]


@dataclass
class SetupConfig:
    batch_dims: int
    frames: Dict[str, _SetupFrame] = field(default_factory=dict)

    def add(self, name: str, layer: SetupSublayer,
            required_tensors: List[str], constraints: List[str]) -> None:
        if name in self.frames:
            raise ValueError(f"An entry with the name '{name}' already exists.")
        self.frames[name] = _SetupFrame(layer=layer,
                                        required_tensors=required_tensors,
                                        constraints=constraints)


@dataclass
class _StringListHolder:
    string_list: List[str]


@dataclass
class BundleTensor:
    """Minimal stand-in for Core.BundleTensor: batch dims + tensors + constraints."""
    batch_dims: int
    tensors: Dict[str, jax.Array]
    constraints: Dict[str, List[str]]


class Setup:
    """JAX/Pallas port of the PyTorch Setup layer (dispatcher; no compute itself)."""

    def __init__(self, config: SetupConfig):
        names: List[str] = []
        layers: Dict[str, SetupSublayer] = {}
        required_tensors: Dict[str, _StringListHolder] = {}
        constraints: Dict[str, _StringListHolder] = {}
        for key in config.frames.keys():
            names.append(key)
            frame = config.frames[key]
            layers[key] = frame.layer
            required_tensors[key] = _StringListHolder(frame.required_tensors)
            constraints[key] = _StringListHolder(frame.constraints)
        self.batch_dims = config.batch_dims
        self.names = names
        self.layers = layers
        self.requirements = required_tensors
        self.constraints = constraints

    def forward(self, batch_shape, tensors: Optional[Dict[str, jax.Array]] = None) -> BundleTensor:
        if tensors is None:
            tensors = {}
        batch_shape_list = [int(s) for s in (batch_shape if hasattr(batch_shape, "__len__")
                                             else [batch_shape])]
        assert len(batch_shape_list) == self.batch_dims
        bundle_tensors: Dict[str, jax.Array] = {}
        bundle_constraints: Dict[str, List[str]] = {}
        for key, layer in self.layers.items():
            needed_names = self.requirements[key].string_list
            needed_tensors = {name: tensors[name] for name in needed_names}
            initialized_tensor = layer.forward(batch_shape_list, needed_tensors)
            bundle_tensors[key] = initialized_tensor
            bundle_constraints[key] = self.constraints[key].string_list
        return BundleTensor(self.batch_dims, bundle_tensors, bundle_constraints)

    __call__ = forward


# ----------------------------------------------------------------------------
# Demo / smoke test
# ----------------------------------------------------------------------------

if __name__ == "__main__":
    # Lane-aligned shapes: hidden/state_dim multiples of 128. seq is sized so
    # the seq grid axis runs multiple steps at the production tile sizes
    # (exercising the f32 accumulator init/finalize across grid iterations).
    batch, seq, hidden, slots, state_dim = 16, 4096, 128, 8, 128

    key = jax.random.PRNGKey(0)
    k_emb, k_def, k_w = jax.random.split(key, 3)

    # deterministic "parameters"
    default_state = jax.random.normal(k_def, (slots, hidden), dtype=jnp.float32)
    proj_weight = jax.random.normal(k_w, (hidden, state_dim), dtype=jnp.float32) * 0.1

    # deterministic content input (layout: [batch, seq, hidden])
    embedding = jax.random.normal(k_emb, (batch, seq, hidden), dtype=jnp.float32)

    # build the config exactly like the PyTorch usage pattern
    config = SetupConfig(batch_dims=1)
    config.add("memory", ConstantStateSetup(default_state),
               required_tensors=[], constraints=["positive_definite"])
    config.add("summary", PooledProjectionSetup(proj_weight),
               required_tensors=["embedding"], constraints=["unit_norm"])

    setup = Setup(config)
    bundle = setup([batch], {"embedding": embedding})

    # block on results
    for v in bundle.tensors.values():
        jax.block_until_ready(v)

    # correctness check against plain-JAX reference
    ref_memory = jnp.broadcast_to(default_state[None], (batch, slots, hidden))
    ref_summary = jnp.mean(
        jnp.einsum("bsh,hd->bsd", embedding, proj_weight,
                   precision=jax.lax.Precision.HIGHEST),
        axis=1)
    assert bundle.tensors["memory"].shape == (batch, slots, hidden)
    assert bundle.tensors["summary"].shape == (batch, state_dim)
    assert jnp.allclose(bundle.tensors["memory"], ref_memory, atol=1e-5)
    assert jnp.allclose(bundle.tensors["summary"], ref_summary, atol=1e-4, rtol=1e-4)
    assert bundle.constraints == {"memory": ["positive_definite"],
                                  "summary": ["unit_norm"]}

    print("KERNEL_OK")
</pallas_src>

<mosaic_0001>
module attributes {stable_mosaic.version = 11 : i64} {
  func.func @_fill_kernel(%arg0: i32, %arg1: memref<1x1024xf32, #tpu.memory_space<vmem>>, %arg2: memref<16x1024xf32, #tpu.memory_space<vmem>>) attributes {dimension_semantics = [#tpu.dimension_semantics<parallel>], iteration_bounds = array<i64: 1>, scalar_prefetch = 0 : i64, scratch_operands = 0 : i64, tpu.core_type = #tpu.core_type<tc>, window_params = [{pipeline_mode = #tpu.pipeline_mode<synchronous>, transform_indices = @transform_0, window_bounds = array<i64: 1, 1024>}, {transform_indices = @transform_1, window_bounds = array<i64: 16, 1024>}]} {
    %c0 = arith.constant 0 : index
    %c0_0 = arith.constant 0 : index
    %0 = vector.load %arg1[%c0, %c0_0] : memref<1x1024xf32, #tpu.memory_space<vmem>>, vector<1x1024xf32>
    %1 = vector.shape_cast %0 : vector<1x1024xf32> to vector<1x1024xf32>
    %2 = vector.broadcast %1 : vector<1x1024xf32> to vector<16x1024xf32>
    %c0_1 = arith.constant 0 : index
    %c0_2 = arith.constant 0 : index
    %3 = vector.load %arg2[%c0_1, %c0_2] : memref<16x1024xf32, #tpu.memory_space<vmem>>, vector<16x1024xf32>
    tpu.vector_store %arg2[%c0_1, %c0_2], %2 {strides = array<i32>} : memref<16x1024xf32, #tpu.memory_space<vmem>>, vector<16x1024xf32>,
    return
  }
  func.func @transform_0(%arg0: i32) -> (i32, i32) {
    %c0_i32 = arith.constant 0 : i32
    %c0_i32_0 = arith.constant 0 : i32
    %c0_i32_1 = arith.constant 0 : i32
    return %c0_i32, %c0_i32_0 : i32, i32
  }
  func.func @transform_1(%arg0: i32) -> (i32, i32) {
    %c0_i32 = arith.constant 0 : i32
    %c0_i32_0 = arith.constant 0 : i32
    return %arg0, %c0_i32 : i32, i32
  }
}

</mosaic_0001>

<bundles_post_ra>
// kernel: tpu_custom_call.1
= control target key start
LH: loop header
LB: loop body
LE: loop exit
PB: predicated region body
PF: predicated region fallthrough
CT: control target
= control target key end

     0   :  { %6 = vsyncpa [#allocation3], 0  ;;  %s193_s0 = inlined_call_operand.hbm [shape: f32[1,1024], index: 0, kind: input, shape index: {}]   ;;  %s194_s1 = inlined_call_operand.hbm [shape: f32[16,1024], index: 1, kind: output, shape index: {}]  }
   0x1   :  { %7 = vsyncpa [#allocation4], 0  ;;  %s148_s6 = smov [#allocation2]   ;;  %s100_s10 = scalar_lea.hbm %s193_s0, 128 }
   0x2   :  { %s14_s7 = sshll.u32 %s148_s6, 4  ;;  %p101_p0 = scmp.ne.s32.totalorder %s193_s0, %s100_s10  ;;  %s15_s7 = int_to_ptr.vmem [resolvable:$true] %s14_s7 }
   0x3   :  { %p104_p1 = scmp.lt.u32.totalorder %s100_s10, %s193_s0 }
   0x5   :  { %p106_p2 = pnand %p104_p1, %p101_p0 }
   0x7   :  { %109 = shalt.err (!%p106_p2)
}
   0x8   :  { %s110_s15 = scalar_lea.vmem %s15_s7, 128  ;;  %p115_p4 = scmp.lt.s32.totalorder %s15_s7, %s15_s7 }
   0x9   :  { %p111_p3 = scmp.ne.s32.totalorder %s15_s7, %s110_s15  ;;  %p116_p5 = scmp.lt.s32.totalorder %s110_s15, %s110_s15 }
   0xb   :  { %p117_p6 = por %p116_p5, %p115_p4 }
   0xd   :  { %p118_p7 = pnand %p117_p6, %p111_p3 }
   0xf   :  { %121 = shalt.err (!%p118_p7)
}
  0x10   :  { %17 = dma.hbm_to_vmem [thread:$0]  %s193_s0, 128, %s15_s7, [#allocation3]  }
  0x11   :  { %144 = dma.done.wait [#allocation3], 128  }
  0x12   :  { %145 = vsyncadd [#allocation3], 4294967168  ;;  %v23_v0 = vlaneseq  ;;  %s149_s18 = smov [#allocation5]   ;;  %v21_v10 = vld [vmem:[#allocation2] sm:$0xff] }
  0x13   :  { %s84_s19 = sshll.u32 %s149_s18, 4  ;;  %s174_s19 = int_to_ptr.vmem [resolvable:$true] %s84_s19 }
  0x14   :  { %v24_v1 = vshrl.u32 %v23_v0, 7  ;;  %s122_s0 = scalar_lea.vmem %s174_s19, 2048  ;;  %p127_p9 = scmp.lt.s32.totalorder %s174_s19, %s174_s19 }
  0x15   :  { %p123_p8 = scmp.ne.s32.totalorder %s174_s19, %s122_s0  ;;  %p128_p10 = scmp.lt.s32.totalorder %s122_s0, %s122_s0 }
  0x16   :  { %v25_v2 = vsub.s32 0, %v24_v1  ;;  %v29_v3 = vsub.s32 1, %v24_v1  ;;  %v33_v4 = vsub.s32 2, %v24_v1  ;;  %v37_v5 = vsub.s32 3, %v24_v1 }
  0x17   :  { %v41_v6 = vsub.s32 4, %v24_v1  ;;  %v45_v7 = vsub.s32 5, %v24_v1  ;;  %v49_v8 = vsub.s32 6, %v24_v1  ;;  %v53_v9 = vsub.s32 7, %v24_v1  ;;  %p129_p11 = por %p128_p10, %p127_p9 }
  0x18   :  { %v26_v11 = vrot.slane %v21_v10, %v25_v2  ;;  %v30_v12 = vrot.slane %v21_v10, %v29_v3  ;;  %v34_v13 = vrot.slane %v21_v10, %v33_v4  ;;  %v38_v14 = vrot.slane %v21_v10, %v37_v5 }
  0x19   :  { %v42_v15 = vrot.slane %v21_v10, %v41_v6  ;;  %v46_v16 = vrot.slane %v21_v10, %v45_v7  ;;  %v50_v17 = vrot.slane %v21_v10, %v49_v8  ;;  %v54_v18 = vrot.slane %v21_v10, %v53_v9  ;;  %p130_p12 = pnand %p129_p11, %p123_p8 }
  0x1a   :  { %63 = vst [vmem:[#allocation5] sm:$0xff] %v26_v11  ;;  %71 = vst [vmem:[#allocation5 + $0x40] sm:$0xff] %v26_v11 }
  0x1b   :  { %64 = vst [vmem:[#allocation5 + $0x8] sm:$0xff] %v30_v12  ;;  %72 = vst [vmem:[#allocation5 + $0x48] sm:$0xff] %v30_v12 }
  0x1c   :  { %65 = vst [vmem:[#allocation5 + $0x10] sm:$0xff] %v34_v13  ;;  %73 = vst [vmem:[#allocation5 + $0x50] sm:$0xff] %v34_v13 }
  0x1d   :  { %66 = vst [vmem:[#allocation5 + $0x18] sm:$0xff] %v38_v14  ;;  %74 = vst [vmem:[#allocation5 + $0x58] sm:$0xff] %v38_v14 }
  0x1e   :  { %67 = vst [vmem:[#allocation5 + $0x20] sm:$0xff] %v42_v15  ;;  %75 = vst [vmem:[#allocation5 + $0x60] sm:$0xff] %v42_v15 }
  0x1f   :  { %68 = vst [vmem:[#allocation5 + $0x28] sm:$0xff] %v46_v16  ;;  %76 = vst [vmem:[#allocation5 + $0x68] sm:$0xff] %v46_v16 }
  0x20   :  { %69 = vst [vmem:[#allocation5 + $0x30] sm:$0xff] %v50_v17  ;;  %77 = vst [vmem:[#allocation5 + $0x70] sm:$0xff] %v50_v17 }
  0x21   :  { %70 = vst [vmem:[#allocation5 + $0x38] sm:$0xff] %v54_v18  ;;  %78 = vst [vmem:[#allocation5 + $0x78] sm:$0xff] %v54_v18 }
  0x22   :  { %133 = shalt.err (!%p130_p12)
}
  0x23   :  { %s134_s22 = scalar_lea.hbm %s194_s1, 2048 }
  0x24   :  { %p135_p13 = scmp.ne.s32.totalorder %s194_s1, %s134_s22  ;;  %p138_p0 = scmp.lt.u32.totalorder %s134_s22, %s194_s1 }
  0x26   :  { %p140_p1 = pnand %p138_p0, %p135_p13 }
  0x28   :  { %143 = shalt.err (!%p140_p1)
}
  0x29   :  { %s150_s27 = smov 1024   ;;  %s151_s28 = smov 64  }
  0x2a   :  { %90 = dma.vmem_to_hbm [thread:$0]  %s174_s19, 2048, %s194_s1, [#allocation4], %s150_s27, %s150_s27, %s151_s28  }
  0x2b   :  { %146 = dma.done.wait [#allocation4], 2048  }
  0x2c   :  { %147 = vsyncadd [#allocation4], 4294965248 }
  0x2d   :  { %94 = vsyncpa [#allocation3], 1 }
  0x2e   :  { %95 = vsyncpa [#allocation4], 1 }

</bundles_post_ra>
